<compile_context>
chip_gen: v5e
topology: v5e:2x2
jax: 0.10.0
libtpu: 0.0.40
codegen_flags: <defaults>
</compile_context>

<pallas_src>
import functools

import jax
import jax.numpy as jnp
from jax.experimental import pallas as pl
from jax.experimental.pallas import tpu as pltpu


_NEG_BIG = -1e30   # pad value for padded M columns (exp underflows to exactly 0)


def _round_up(a, b):
    return (a + b - 1) // b * b


# ---------------------------------------------------------------------------
# Pass 1: per-class online softmax stats over the M (lane) axis + target-logit
# extraction. x is lane-dense (C, M); the grid runs over M tiles.
# ---------------------------------------------------------------------------
def _stats_kernel(x_ref, tgt_ref, xt_ref, d_ref, m_sc, s_sc):
    step = pl.program_id(0)

    @pl.when(step == 0)
    def _init():
        m_sc[...] = jnp.full_like(m_sc, -jnp.inf)
        s_sc[...] = jnp.zeros_like(s_sc)

    x = x_ref[...].astype(jnp.float32)                     # (C, tm)
    tgt = tgt_ref[...]                                     # (1, tm) int32

    # streaming per-class max / sum-exp over the lane axis (dim-0 softmax stats)
    tile_max = jnp.max(x, axis=1, keepdims=True)           # (C, 1)
    m_old = m_sc[...]
    m_new = jnp.maximum(m_old, tile_max)
    scale = jnp.exp(m_old - m_new)                         # exactly 0 on the first step
    s_sc[...] = s_sc[...] * scale + jnp.sum(jnp.exp(x - m_new), axis=1, keepdims=True)
    m_sc[...] = m_new

    # gather x[target_i, i] per column via a one-hot over the (small) class axis
    C, tm = x.shape
    row_iota = jax.lax.broadcasted_iota(jnp.int32, (C, tm), 0)
    onehot = row_iota == tgt                               # (C, tm) via broadcast
    xt_ref[...] = jnp.sum(jnp.where(onehot, x, 0.0), axis=0, keepdims=True)  # (1, tm)

    @pl.when(step == pl.num_programs(0) - 1)
    def _finalize():
        # per-class log-normalizer of the dim-0 softmax: max_c + log(sumexp_c)
        d_ref[...] = m_sc[...] + jnp.log(s_sc[...])


# ---------------------------------------------------------------------------
# Pass 2: logpt / pt / focal term / reduction — reads only (1, M) rows.
# ---------------------------------------------------------------------------
def _loss_kernel(d_ref, xt_ref, tgt_ref, at_ref, out_ref, acc_sc, *,
                 gamma, m_real, size_average):
    step = pl.program_id(0)

    @pl.when(step == 0)
    def _init():
        acc_sc[...] = jnp.zeros_like(acc_sc)

    xt = xt_ref[...]                 # (1, tm) target logit x[t_i, i]
    tgt = tgt_ref[...]               # (1, tm) int32
    at = at_ref[...]                 # (1, tm) alpha[t_i]  (ones when alpha is None)
    d = d_ref[...]                   # (C, 1)  per-class log-normalizer

    C = d.shape[0]
    tm = xt.shape[1]

    # d[t_i] per column via one-hot over the small class axis
    row_iota = jax.lax.broadcasted_iota(jnp.int32, (C, tm), 0)
    onehot = row_iota == tgt
    d_t = jnp.sum(jnp.where(onehot, d, 0.0), axis=0, keepdims=True)   # (1, tm)

    logpt = xt - d_t                 # log_softmax(x, dim=0)[i, t_i]
    pt = jnp.exp(logpt)              # pt is taken BEFORE the alpha scaling (as in torch)
    logpt = logpt * at               # at == 1.0 when alpha is None (exact no-op)

    one_minus_pt = jnp.maximum(1.0 - pt, 0.0)   # exp rounding can give pt > 1

    # gamma specialization: avoid pow -> exp(log(.)) on the EUP for common gammas
    if float(gamma) == 0.0:
        loss = -logpt
    else:
        gi = int(gamma)
        if float(gi) == float(gamma) and 1 <= gi <= 8:
            focal = one_minus_pt
            for _ in range(gi - 1):
                focal = focal * one_minus_pt
        else:
            focal = one_minus_pt ** jnp.float32(gamma)
        loss = -(focal * logpt)

    # mask out padded M columns (M was padded up to a multiple of the tile)
    col = jax.lax.broadcasted_iota(jnp.int32, (1, tm), 1) + step * tm
    loss = jnp.where(col < m_real, loss, 0.0)

    acc_sc[...] = acc_sc[...] + jnp.sum(loss, axis=1, keepdims=True)

    @pl.when(step == pl.num_programs(0) - 1)
    def _finalize():
        total = acc_sc[...]
        if size_average:
            total = total / jnp.float32(m_real)
        out_ref[...] = total


# ---------------------------------------------------------------------------
# Wrapper
# ---------------------------------------------------------------------------
def focal_loss(x, target, gamma=0.0, alpha=None, size_average=True, block_m=16384):
    """Pallas TPU implementation of FocalLoss.forward."""
    x = jnp.asarray(x)
    target = jnp.asarray(target)

    # --- replicate the PyTorch reshape, but transposed to lane-dense (C, M) ---
    if x.ndim > 2:
        N, C = x.shape[0], x.shape[1]
        # (N,C,HW) -> (C,N,HW) -> (C, N*HW); column order matches target.reshape(-1)
        x_cm = jnp.transpose(x.reshape(N, C, -1), (1, 0, 2)).reshape(C, -1)
    else:
        C = x.shape[1]
        x_cm = x.T
    x_cm = x_cm.astype(jnp.float32)
    M = x_cm.shape[1]
    tflat = target.reshape(-1).astype(jnp.int32)

    # --- alpha handling (mirrors FocalLoss.__init__) ---
    if isinstance(alpha, (float, int)) and not isinstance(alpha, bool):
        alpha_arr = jnp.array([alpha, 1.0 - alpha], dtype=jnp.float32)
    elif isinstance(alpha, (list, tuple)):
        alpha_arr = jnp.array(alpha, dtype=jnp.float32)
    elif alpha is None:
        alpha_arr = None
    else:
        alpha_arr = jnp.asarray(alpha, dtype=jnp.float32)

    # --- tile size: big enough to amortize the ~0.35us per-step overhead, small
    #     enough that all double-buffered tiles stay well under scoped VMEM on
    #     every TPU generation (v5e 16 MiB default, v7x 64 MiB physical). ---
    vmem_budget = 8 * 1024 * 1024                       # bytes for pipelined tiles
    bytes_per_col = (C + 3) * 4 * 2                     # x col + (tgt, xt, at), double-buffered
    tm_cap = max(128, (vmem_budget // bytes_per_col) // 128 * 128)
    tm = int(min(block_m, tm_cap, _round_up(max(M, 1), 128)))
    m_pad = _round_up(M, tm)
    n_tiles = m_pad // tm
    pad = m_pad - M

    if pad:
        x_cm = jnp.pad(x_cm, ((0, 0), (0, pad)), constant_values=_NEG_BIG)
        tflat = jnp.pad(tflat, (0, pad))
    tgt_row = tflat.reshape(1, m_pad)

    if alpha_arr is not None:
        # precompute alpha[target] in the wrapper (tiny gather) -> (1, M) lane-dense row
        at = jnp.take(alpha_arr, target.reshape(-1).astype(jnp.int32))
        if pad:
            at = jnp.pad(at, (0, pad))
        at_row = at.astype(jnp.float32).reshape(1, m_pad)
        at_spec = pl.BlockSpec((1, tm), lambda i: (0, i))
    else:
        # constant ones kept resident (same block every step) -> no per-step HBM traffic
        at_row = jnp.ones((1, tm), dtype=jnp.float32)
        at_spec = pl.BlockSpec((1, tm), lambda i: (0, 0))

    cparams = pltpu.CompilerParams(
        dimension_semantics=("arbitrary",),             # carried state / reduction over M
        vmem_limit_bytes=32 * 1024 * 1024,
    )

    # --- pass 1: dim-0 softmax stats + target-logit extraction ---
    xt_row, d = pl.pallas_call(
        _stats_kernel,
        out_shape=(
            jax.ShapeDtypeStruct((1, m_pad), jnp.float32),   # x[t_i, i]
            jax.ShapeDtypeStruct((C, 1), jnp.float32),       # max_c + log(sumexp_c)
        ),
        grid_spec=pltpu.PrefetchScalarGridSpec(
            num_scalar_prefetch=0,
            grid=(n_tiles,),
            in_specs=[
                pl.BlockSpec((C, tm), lambda i: (0, i)),     # x tile, lane-dense
                pl.BlockSpec((1, tm), lambda i: (0, i)),     # target tile
            ],
            out_specs=[
                pl.BlockSpec((1, tm), lambda i: (0, i)),     # target-logit tile
                pl.BlockSpec((C, 1), lambda i: (0, 0)),      # resident across grid
            ],
            scratch_shapes=[
                pltpu.VMEM((C, 1), jnp.float32),             # running per-class max
                pltpu.VMEM((C, 1), jnp.float32),             # running per-class sum-exp
            ],
        ),
        compiler_params=cparams,
    )(x_cm, tgt_row)

    # --- pass 2: focal loss from the (1, M) buffers only ---
    kernel2 = functools.partial(
        _loss_kernel,
        gamma=float(gamma),
        m_real=int(M),
        size_average=bool(size_average),
    )
    out = pl.pallas_call(
        kernel2,
        out_shape=jax.ShapeDtypeStruct((1, 1), jnp.float32),
        grid_spec=pltpu.PrefetchScalarGridSpec(
            num_scalar_prefetch=0,
            grid=(n_tiles,),
            in_specs=[
                pl.BlockSpec((C, 1), lambda i: (0, 0)),      # d (resident)
                pl.BlockSpec((1, tm), lambda i: (0, i)),     # target logit
                pl.BlockSpec((1, tm), lambda i: (0, i)),     # target class
                at_spec,                                     # alpha[target] (or ones)
            ],
            out_specs=pl.BlockSpec((1, 1), lambda i: (0, 0)),
            scratch_shapes=[pltpu.VMEM((1, 1), jnp.float32)],  # f32 loss accumulator
        ),
        compiler_params=cparams,
    )(d, xt_row, tgt_row, at_row)
    return out[0, 0]


# ---------------------------------------------------------------------------
# Pure-JAX reference (mirrors the PyTorch forward) for the correctness check.
# ---------------------------------------------------------------------------
def _focal_loss_ref(x, target, gamma, alpha, size_average):
    if x.ndim > 2:
        N, C = x.shape[0], x.shape[1]
        x2d = x.reshape(N, C, -1).transpose(0, 2, 1).reshape(-1, C)
    else:
        x2d = x
    x2d = x2d.astype(jnp.float32)
    t = target.reshape(-1).astype(jnp.int32)
    logsm = jax.nn.log_softmax(x2d, axis=0)
    logpt = logsm[jnp.arange(t.shape[0]), t]
    pt = jnp.exp(logpt)
    if alpha is not None:
        if isinstance(alpha, (float, int)) and not isinstance(alpha, bool):
            alpha_arr = jnp.array([alpha, 1.0 - alpha], dtype=jnp.float32)
        else:
            alpha_arr = jnp.asarray(alpha, dtype=jnp.float32)
        logpt = logpt * alpha_arr[t]
    loss = -1.0 * (1.0 - pt) ** float(gamma) * logpt
    return jnp.mean(loss) if size_average else jnp.sum(loss)


if __name__ == "__main__":
    key = jax.random.PRNGKey(0)
    kx, kt = jax.random.split(key)

    # NCHW logits, per-pixel integer class targets (segmentation-style head)
    N, C, H, W = 2, 4, 16, 16
    x = jax.random.normal(kx, (N, C, H, W), dtype=jnp.float32)
    target = jax.random.randint(kt, (N, H, W), 0, C, dtype=jnp.int32)

    # main path: integer gamma, per-class alpha, mean reduction
    gamma = 2.0
    alpha = [0.1, 0.2, 0.3, 0.4]
    loss = focal_loss(x, target, gamma=gamma, alpha=alpha, size_average=True)
    loss = jax.block_until_ready(loss)
    ref = _focal_loss_ref(x, target, gamma, alpha, True)
    assert abs(float(loss) - float(ref)) <= 1e-5 * max(1.0, abs(float(ref))), (
        f"mismatch: pallas={float(loss)} ref={float(ref)}")

    # secondary path: gamma=0, no alpha, sum reduction
    loss2 = focal_loss(x, target, gamma=0.0, alpha=None, size_average=False)
    loss2 = jax.block_until_ready(loss2)
    ref2 = _focal_loss_ref(x, target, 0.0, None, False)
    assert abs(float(loss2) - float(ref2)) <= 1e-4 * max(1.0, abs(float(ref2))), (
        f"mismatch (no-alpha): pallas={float(loss2)} ref={float(ref2)}")

    print("KERNEL_OK")
</pallas_src>

<mosaic_0001>
module attributes {stable_mosaic.version = 11 : i64} {
  func.func @_stats_kernel(%arg0: i32, %arg1: memref<4x512xf32, #tpu.memory_space<vmem>>, %arg2: memref<1x512xi32, #tpu.memory_space<vmem>>, %arg3: memref<1x512xf32, #tpu.memory_space<vmem>>, %arg4: memref<4x1xf32, #tpu.memory_space<vmem>>, %arg5: memref<4x1xf32, #tpu.memory_space<vmem>>, %arg6: memref<4x1xf32, #tpu.memory_space<vmem>>) attributes {dimension_semantics = [#tpu.dimension_semantics<arbitrary>], iteration_bounds = array<i64: 1>, scalar_prefetch = 0 : i64, scratch_operands = 2 : i64, tpu.core_type = #tpu.core_type<tc>, window_params = [{transform_indices = @transform_0, window_bounds = array<i64: 4, 512>}, {transform_indices = @transform_1, window_bounds = array<i64: 1, 512>}, {transform_indices = @transform_2, window_bounds = array<i64: 1, 512>}, {pipeline_mode = #tpu.pipeline_mode<synchronous>, transform_indices = @transform_3, window_bounds = array<i64: 4, 1>}]} {
    %c0_i32 = arith.constant 0 : i32
    %0 = arith.cmpi eq, %arg0, %c0_i32 : i32
    %1 = arith.extui %0 : i1 to i32
    %c0_i32_0 = arith.constant 0 : i32
    %2 = arith.cmpi ne, %1, %c0_i32_0 : i32
    scf.if %2 {
      %cst_19 = arith.constant 0xFF800000 : f32
      %32 = vector.broadcast %cst_19 : f32 to vector<4x1xf32>
      %c0_20 = arith.constant 0 : index
      %c0_21 = arith.constant 0 : index
      %33 = vector.load %arg5[%c0_20, %c0_21] : memref<4x1xf32, #tpu.memory_space<vmem>>, vector<4x1xf32>
      tpu.vector_store %arg5[%c0_20, %c0_21], %32 {strides = array<i32>} : memref<4x1xf32, #tpu.memory_space<vmem>>, vector<4x1xf32>,
      %cst_22 = arith.constant 0.000000e+00 : f32
      %34 = vector.broadcast %cst_22 : f32 to vector<4x1xf32>
      %c0_23 = arith.constant 0 : index
      %c0_24 = arith.constant 0 : index
      %35 = vector.load %arg6[%c0_23, %c0_24] : memref<4x1xf32, #tpu.memory_space<vmem>>, vector<4x1xf32>
      tpu.vector_store %arg6[%c0_23, %c0_24], %34 {strides = array<i32>} : memref<4x1xf32, #tpu.memory_space<vmem>>, vector<4x1xf32>,
    } else {
    }
    %c0 = arith.constant 0 : index
    %c0_1 = arith.constant 0 : index
    %3 = vector.load %arg1[%c0, %c0_1] : memref<4x512xf32, #tpu.memory_space<vmem>>, vector<4x512xf32>
    %c0_2 = arith.constant 0 : index
    %c0_3 = arith.constant 0 : index
    %4 = vector.load %arg2[%c0_2, %c0_3] : memref<1x512xi32, #tpu.memory_space<vmem>>, vector<1x512xi32>
    %cst = arith.constant dense<0xFF800000> : vector<4xf32>
    %5 = vector.multi_reduction <maximumf>, %3, %cst [1] : vector<4x512xf32> to vector<4xf32>
    %6 = vector.shape_cast %5 : vector<4xf32> to vector<4x1xf32>
    %c0_4 = arith.constant 0 : index
    %c0_5 = arith.constant 0 : index
    %7 = vector.load %arg5[%c0_4, %c0_5] : memref<4x1xf32, #tpu.memory_space<vmem>>, vector<4x1xf32>
    %8 = arith.maximumf %7, %6 : vector<4x1xf32>
    %9 = arith.subf %7, %8 : vector<4x1xf32>
    %10 = math.exp %9 : vector<4x1xf32>
    %c0_6 = arith.constant 0 : index
    %c0_7 = arith.constant 0 : index
    %11 = vector.load %arg6[%c0_6, %c0_7] : memref<4x1xf32, #tpu.memory_space<vmem>>, vector<4x1xf32>
    %12 = arith.mulf %11, %10 : vector<4x1xf32>
    %13 = vector.broadcast %8 : vector<4x1xf32> to vector<4x512xf32>
    %14 = arith.subf %3, %13 : vector<4x512xf32>
    %15 = math.exp %14 : vector<4x512xf32>
    %cst_8 = arith.constant dense<0.000000e+00> : vector<4xf32>
    %16 = vector.multi_reduction <add>, %15, %cst_8 [1] : vector<4x512xf32> to vector<4xf32>
    %17 = vector.shape_cast %16 : vector<4xf32> to vector<4x1xf32>
    %18 = arith.addf %12, %17 : vector<4x1xf32>
    %c0_9 = arith.constant 0 : index
    %c0_10 = arith.constant 0 : index
    %19 = vector.load %arg6[%c0_9, %c0_10] : memref<4x1xf32, #tpu.memory_space<vmem>>, vector<4x1xf32>
    tpu.vector_store %arg6[%c0_9, %c0_10], %18 {strides = array<i32>} : memref<4x1xf32, #tpu.memory_space<vmem>>, vector<4x1xf32>,
    %c0_11 = arith.constant 0 : index
    %c0_12 = arith.constant 0 : index
    %20 = vector.load %arg5[%c0_11, %c0_12] : memref<4x1xf32, #tpu.memory_space<vmem>>, vector<4x1xf32>
    tpu.vector_store %arg5[%c0_11, %c0_12], %8 {strides = array<i32>} : memref<4x1xf32, #tpu.memory_space<vmem>>, vector<4x1xf32>,
    %21 = tpu.iota {dimensions = array<i32: 0>} : vector<4x512xi32>
    %22 = vector.broadcast %4 : vector<1x512xi32> to vector<4x512xi32>
    %23 = arith.cmpi eq, %21, %22 : vector<4x512xi32>
    %cst_13 = arith.constant 0.000000e+00 : f32
    %24 = vector.broadcast %cst_13 : f32 to vector<4x512xf32>
    %25 = arith.select %23, %3, %24 : vector<4x512xi1>, vector<4x512xf32>
    %cst_14 = arith.constant dense<0.000000e+00> : vector<512xf32>
    %26 = vector.multi_reduction <add>, %25, %cst_14 [0] : vector<4x512xf32> to vector<512xf32>
    %27 = vector.shape_cast %26 : vector<512xf32> to vector<1x512xf32>
    %c0_15 = arith.constant 0 : index
    %c0_16 = arith.constant 0 : index
    %28 = vector.load %arg3[%c0_15, %c0_16] : memref<1x512xf32, #tpu.memory_space<vmem>>, vector<1x512xf32>
    tpu.vector_store %arg3[%c0_15, %c0_16], %27 {strides = array<i32>} : memref<1x512xf32, #tpu.memory_space<vmem>>, vector<1x512xf32>,
    %c0_i32_17 = arith.constant 0 : i32
    %29 = arith.cmpi eq, %arg0, %c0_i32_17 : i32
    %30 = arith.extui %29 : i1 to i32
    %c0_i32_18 = arith.constant 0 : i32
    %31 = arith.cmpi ne, %30, %c0_i32_18 : i32
    scf.if %31 {
      %c0_19 = arith.constant 0 : index
      %c0_20 = arith.constant 0 : index
      %32 = vector.load %arg5[%c0_19, %c0_20] : memref<4x1xf32, #tpu.memory_space<vmem>>, vector<4x1xf32>
      %c0_21 = arith.constant 0 : index
      %c0_22 = arith.constant 0 : index
      %33 = vector.load %arg6[%c0_21, %c0_22] : memref<4x1xf32, #tpu.memory_space<vmem>>, vector<4x1xf32>
      %34 = math.log %33 : vector<4x1xf32>
      %35 = arith.addf %32, %34 : vector<4x1xf32>
      %c0_23 = arith.constant 0 : index
      %c0_24 = arith.constant 0 : index
      %36 = vector.load %arg4[%c0_23, %c0_24] : memref<4x1xf32, #tpu.memory_space<vmem>>, vector<4x1xf32>
      tpu.vector_store %arg4[%c0_23, %c0_24], %35 {strides = array<i32>} : memref<4x1xf32, #tpu.memory_space<vmem>>, vector<4x1xf32>,
    } else {
    }
    return
  }
  func.func @transform_0(%arg0: i32) -> (i32, i32) {
    %c0_i32 = arith.constant 0 : i32
    %c0_i32_0 = arith.constant 0 : i32
    return %c0_i32, %arg0 : i32, i32
  }
  func.func @transform_1(%arg0: i32) -> (i32, i32) {
    %c0_i32 = arith.constant 0 : i32
    %c0_i32_0 = arith.constant 0 : i32
    return %c0_i32, %arg0 : i32, i32
  }
  func.func @transform_2(%arg0: i32) -> (i32, i32) {
    %c0_i32 = arith.constant 0 : i32
    %c0_i32_0 = arith.constant 0 : i32
    return %c0_i32, %arg0 : i32, i32
  }
  func.func @transform_3(%arg0: i32) -> (i32, i32) {
    %c0_i32 = arith.constant 0 : i32
    %c0_i32_0 = arith.constant 0 : i32
    %c0_i32_1 = arith.constant 0 : i32
    return %c0_i32, %c0_i32_0 : i32, i32
  }
}

</mosaic_0001>

<bundles_post_ra>
// kernel: tpu_custom_call.1
= control target key start
LH: loop header
LB: loop body
LE: loop exit
PB: predicated region body
PF: predicated region fallthrough
CT: control target
= control target key end

     0   :  { %9 = vsyncpa [#allocation5], 0  ;;  %s388_s0 = inlined_call_operand.hbm [shape: f32[4,512], index: 0, kind: input, shape index: {}]   ;;  %s389_s1 = inlined_call_operand.hbm [shape: s32[1,512], index: 1, kind: input, shape index: {}]   ;;  %s390_s2 = inlined_call_operand.hbm [shape: f32[1,512], index: 2, kind: output, shape index: {0}]   ;;  %s391_s3 = inlined_call_operand.vmem [shape: f32[4,1], index: 3, kind: output, shape index: {1}]  }
   0x1   :  { %10 = vsyncpa [#allocation8], 0 }
   0x2   :  { %11 = vsyncpa [#allocation6], 0  ;;  %s17_s14 = sshll.u32 %s388_s0, 4  ;;  %s320_s15 = smov [#allocation4]   ;;  %s18_s14 = int_to_ptr.hbm [resolvable:$true] %s17_s14 }
   0x3   :  { %s19_s16 = sshll.u32 %s320_s15, 4  ;;  %s28_s19 = sshll.u32 %s389_s1, 4  ;;  %s20_s16 = int_to_ptr.vmem [resolvable:$true] %s19_s16  ;;  %s29_s19 = int_to_ptr.hbm [resolvable:$true] %s28_s19 }
   0x4   :  { %22 = dma.hbm_to_vmem [thread:$0]  %s18_s14, 256, %s20_s16, [#allocation5]  }
   0x5   :  { %s321_s20 = smov [#allocation7]  }
   0x6   :  { %s30_s21 = sshll.u32 %s321_s20, 4  ;;  %s31_s21 = int_to_ptr.vmem [resolvable:$true] %s30_s21 }
   0x7   :  { %33 = dma.hbm_to_vmem [thread:$0]  %s29_s19, 64, %s31_s21, [#allocation8]  }
   0x8   :  { %314 = dma.done.wait [#allocation5], 256  }
   0x9   :  { %315 = vsyncadd [#allocation5], 4294967040 }
   0xa   :  { %316 = dma.done.wait [#allocation8], 64  }
   0xb   :  { %317 = vsyncadd [#allocation8], 4294967232  ;;  %vm46_vm0 = vcmask 3072   ;;  %v322_v0 = vmov -inf   ;;  %v49_v1 = vld [vmem:[#allocation4] sm:$0xff]  ;;  %v50_v2 = vld [vmem:[#allocation4 + $0x8] sm:$0xff]  ;;  %v123_v42 = vlaneseq }
   0xc   :  { %47 = vst.msk [vmem:[#allocation2] sm:$0xf] %vm46_vm0, %v322_v0  ;;  %vm65_vm1 = vcmask 1043456   ;;  %v323_v14 = vmov 0   ;;  %v324_v15 = vmov 0.0   ;;  %s326_s0 = smov [#allocation9]  }
   0xd   :  { %54 = vst [vmem:[#allocation1] ss:$2 sm:$0xff] %v49_v1  ;;  %233 = vset.pattern.permute.xlu0 %v323_v14  ;;  %v325_v20 = vmov 839922192   ;;  %v51_v43 = vld [vmem:[#allocation7] sm:$0xf] }
   0xe   :  { %56 = vst [vmem:[#allocation1 + $0x10] ss:$2 sm:$0xff] %v50_v2  ;;  %v87_v21 = vunpack.c.l.s4 %v325_v20  ;;  %v124_v44 = vshrl.u32 %v123_v42, 7  ;;  %v126_v45 = vperm.slane %v51_v43, 1  ;;  %v127_v46 = vperm.slane %v51_v43, 2  ;;  %s209_s1 = sshll.u32 %s326_s0, 4  ;;  %s210_s1 = int_to_ptr.vmem [resolvable:$true] %s209_s1 }
   0xf   :  { %48 = vst.msk [vmem:[#allocation3] sm:$0xf] %vm46_vm0, %v324_v15  ;;  %v128_v47 = vperm.slane %v51_v43, 3  ;;  %v125_v48 = vperm.slane %v51_v43, 0  ;;  %s211_s24 = sshll.u32 %s390_s2, 4  ;;  %vm183_vm6 = vcmask 1040384   ;;  %s212_s24 = int_to_ptr.hbm [resolvable:$true] %s211_s24 }
  0x10   :  { %v88_v22 = vunpack.c.0.s8 %v87_v21  ;;  %vm130_vm2 = vcmp.eq.s32.totalorder %v124_v44, %v126_v45  ;;  %vm131_vm3 = vcmp.eq.s32.totalorder %v124_v44, %v127_v46  ;;  %vm185_vm7 = vcmask 1042434  }
  0x11   :  { %vm132_vm4 = vcmp.eq.s32.totalorder %v124_v44, %v128_v47  ;;  %vm129_vm5 = vcmp.eq.s32.totalorder %v124_v44, %v125_v48  ;;  %vm187_vm8 = vcmask 1041408   ;;  %vm192_vm9 = vcmp.lt.s32.totalorder %v123_v42, 512 }
  0x13   :  { %v359_v16 = vld [vmem:[#allocation2] sm:$0xf] }
  0x14   :  { %v57_v3 = vld.sshfl [vmem:[#allocation1] sm:$0xff pattern:$0x75316420]  ;;  %v58_v4 = vld.sshfl [vmem:[#allocation1 + $0x8] sm:$0xff pattern:$0x75316420] }
  0x15   :  { %v59_v5 = vld.sshfl [vmem:[#allocation1 + $0x10] sm:$0xff pattern:$0x75316420]  ;;  %v60_v6 = vld.sshfl [vmem:[#allocation1 + $0x18] sm:$0xff pattern:$0x75316420] }
  0x16   :  { %v66_v7 = vsel %vm65_vm1, %v57_v3, -inf  ;;  %v67_v8 = vsel %vm65_vm1, %v58_v4, -inf  ;;  %v68_v9 = vsel %vm65_vm1, %v59_v5, -inf  ;;  %v69_v10 = vsel %vm65_vm1, %v60_v6, -inf }
  0x17   :  { %v70_v11 = vmax.f32 %v66_v7, %v67_v8  ;;  %v71_v12 = vmax.f32 %v68_v9, %v69_v10 }
  0x19   :  { %v72_v13 = vmax.f32 %v70_v11, %v71_v12 }
  0x1b   :  { %73 = vmax.xlane.f32.xlu0 %v72_v13 }
  0x8e   :  { %v74_v17 = vpop.xlane.xlu0 %73 }
  0x8f   :  { %v362_v18 = vmax.f32 %v359_v16, %v74_v17 }
  0x91   :  { %v77_v19 = vsub.f32 %v359_v16, %v362_v18  ;;  %122 = vst.msk [vmem:[#allocation2] sm:$0xf] %vm46_vm0, %v362_v18  ;;  %84 = vperm.xlu0 %233, %v362_v18  }
 0x103   :  { %v85_v23 = vpop.permute.xlu0 %84 }
 0x104   :  { %v89_v24 = vperm.slane %v85_v23, %v88_v22  ;;  %v78_v23 = vmul.f32 1.442695, %v77_v19  ;;  %v80_v19 = vld [vmem:[#allocation3] sm:$0xf] }
 0x106   :  { %v91_v25 = vsub.f32 %v49_v1, %v89_v24  ;;  %v92_v26 = vsub.f32 %v50_v2, %v89_v24 }
 0x108   :  { %v93_v27 = vmul.f32 1.442695, %v91_v25  ;;  %v95_v28 = vmul.f32 1.442695, %v92_v26 }
 0x10a   :  { %234 = vpow2.f32 %v93_v27 }
 0x10b   :  { %236 = vpow2.f32 %v95_v28 }
 0x10c   :  { %238 = vpow2.f32 %v78_v23 }
 0x110   :  { %v235_v29 = vpop.eup %234 }
 0x111   :  { %v237_v30 = vpop.eup %236  ;;  %99 = vst [vmem:[#allocation1] ss:$2 sm:$0xff] %v235_v29 }
 0x112   :  { %101 = vst [vmem:[#allocation1 + $0x10] ss:$2 sm:$0xff] %v237_v30  ;;  %v239_v18 = vpop.eup %238 }
 0x113   :  { %v81_v30 = vmul.f32 %v239_v18, %v80_v19 }
 0x118   :  { %v102_v31 = vld.sshfl [vmem:[#allocation1] sm:$0xff pattern:$0x75316420]  ;;  %v103_v32 = vld.sshfl [vmem:[#allocation1 + $0x8] sm:$0xff pattern:$0x75316420] }
 0x119   :  { %v104_v33 = vld.sshfl [vmem:[#allocation1 + $0x10] sm:$0xff pattern:$0x75316420]  ;;  %v105_v34 = vld.sshfl [vmem:[#allocation1 + $0x18] sm:$0xff pattern:$0x75316420] }
 0x11a   :  { %v110_v35 = vsel %vm65_vm1, %v102_v31, 0.0  ;;  %v111_v36 = vsel %vm65_vm1, %v103_v32, 0.0  ;;  %133 = vst [vmem:[#allocation1] ss:$2 sm:$0xff] %v49_v1  ;;  %v113_v38 = vsel %vm65_vm1, %v104_v33, 0.0  ;;  %v115_v40 = vsel %vm65_vm1, %v105_v34, 0.0 }
 0x11b   :  { %v112_v37 = vadd.f32 %v111_v36, %v110_v35  ;;  %135 = vst [vmem:[#allocation1 + $0x10] ss:$2 sm:$0xff] %v50_v2  ;;  %v198_v36 = vld [vmem:[#allocation2] sm:$0xf] }
 0x11d   :  { %v114_v39 = vadd.f32 %v113_v38, %v112_v37 }
 0x11f   :  { %v116_v41 = vadd.f32 %v115_v40, %v114_v39 }
 0x121   :  { %117 = vadd.xlane.f32.xlu1 %v116_v41  ;;  %v137_v49 = vld.sshfl [vmem:[#allocation1 + $0x8] sm:$0xff pattern:$0x75316420]  ;;  %v136_v52 = vld.sshfl [vmem:[#allocation1] sm:$0xff pattern:$0x75316420] }
 0x122   :  { %v138_v50 = vld.sshfl [vmem:[#allocation1 + $0x10] sm:$0xff pattern:$0x75316420]  ;;  %v139_v51 = vld.sshfl [vmem:[#allocation1 + $0x18] sm:$0xff pattern:$0x75316420] }
 0x123   :  { %v145_v53 = vsel %vm130_vm2, %v137_v49, 0.0  ;;  %v146_v54 = vsel %vm131_vm3, %v138_v50, 0.0  ;;  %v147_v55 = vsel %vm132_vm4, %v139_v51, 0.0  ;;  %v144_v56 = vsel %vm129_vm5, %v136_v52, 0.0 }
 0x124   :  { %v155_v57 = vsel %vm65_vm1, %v145_v53, 0.0  ;;  %v162_v58 = vsel %vm65_vm1, %v146_v54, 0.0  ;;  %v169_v59 = vsel %vm65_vm1, %v147_v55, 0.0  ;;  %v148_v60 = vsel %vm65_vm1, %v144_v56, 0.0 }
 0x125   :  { %v156_v61 = vrot.slane %v155_v57, 4  ;;  %v163_v62 = vrot.slane %v162_v58, 4  ;;  %v170_v63 = vrot.slane %v169_v59, 4  ;;  %v149_v0 = vrot.slane %v148_v60, 4 }
 0x127   :  { %v157_v1 = vadd.f32 %v156_v61, %v155_v57  ;;  %v164_v2 = vadd.f32 %v163_v62, %v162_v58  ;;  %v171_v3 = vadd.f32 %v170_v63, %v169_v59  ;;  %v150_v4 = vadd.f32 %v149_v0, %v148_v60 }
 0x129   :  { %v158_v5 = vrot.slane %v157_v1, 2  ;;  %v165_v6 = vrot.slane %v164_v2, 2  ;;  %v172_v7 = vrot.slane %v171_v3, 2  ;;  %v151_v8 = vrot.slane %v150_v4, 2 }
 0x12b   :  { %v159_v9 = vadd.f32 %v158_v5, %v157_v1  ;;  %v166_v10 = vadd.f32 %v165_v6, %v164_v2  ;;  %v173_v11 = vadd.f32 %v172_v7, %v171_v3  ;;  %v152_v12 = vadd.f32 %v151_v8, %v150_v4 }
 0x12d   :  { %v160_v13 = vrot.slane %v159_v9, 1  ;;  %v167_v14 = vrot.slane %v166_v10, 1  ;;  %v174_v15 = vrot.slane %v173_v11, 1  ;;  %v153_v17 = vrot.slane %v152_v12, 1 }
 0x12f   :  { %v161_v20 = vadd.f32 %v160_v13, %v159_v9  ;;  %v168_v21 = vadd.f32 %v167_v14, %v166_v10  ;;  %v175_v22 = vadd.f32 %v174_v15, %v173_v11  ;;  %v154_v24 = vadd.f32 %v153_v17, %v152_v12 }
 0x131   :  { %v180_v25 = vrot.slane %v161_v20, 7  ;;  %v181_v26 = vrot.slane %v168_v21, 6  ;;  %v182_v27 = vrot.slane %v175_v22, 5 }
 0x133   :  { %v184_v28 = vsel %vm183_vm6, %v154_v24, %v180_v25  ;;  %v186_v29 = vsel %vm185_vm7, %v181_v26, %v182_v27 }
 0x134   :  { %v188_v16 = vsel %vm187_vm8, %v184_v28, %v186_v29 }
 0x135   :  { %194 = vst.msk [vmem:[#allocation9] sm:$0xf] %vm192_vm9, %v188_v16 }
 0x136   :  { %214 = dma.vmem_to_hbm [thread:$0]  %s210_s1, 64, %s212_s24, [#allocation6]  }
 0x194   :  { %v118_v31 = vpop.xlane.xlu1 %117 }
 0x195   :  { %v119_v32 = vadd.f32 %v118_v31, %v81_v30 }
 0x197   :  { %121 = vst.msk [vmem:[#allocation3] sm:$0xf] %vm46_vm0, %v119_v32 }
 0x19e   :  { %v199_v33 = vld [vmem:[#allocation3] sm:$0xf] }
 0x19f   :  { %240 = vlog2.f32 %v199_v33 }
 0x1a5   :  { %v241_v34 = vpop.eup %240 }
 0x1a6   :  { %v201_v35 = vmul.f32 0.6931472, %v241_v34 }
 0x1a8   :  { %v202_v37 = vadd.f32 %v201_v35, %v198_v36 }
 0x1aa   :  { %203 = vst.msk [vmem:[%s391_s3] sm:$0xf] %vm46_vm0, %v202_v37 }
 0x1ab   :  { %318 = dma.done.wait [#allocation6], 64  }
 0x1ac   :  { %319 = vsyncadd [#allocation6], 4294967232 }
 0x1ad   :  { %223 = vsyncpa [#allocation5], 1 }
 0x1ae   :  { %224 = vsyncpa [#allocation8], 1 }
 0x1af   :  { %225 = vsyncpa [#allocation6], 1 }

</bundles_post_ra>
